<compile_context>
chip_gen: v7x
topology: tpu7x:2x2x1
jax: 0.10.0
libtpu: 0.0.40
codegen_flags: <defaults>
</compile_context>

<pallas_src>
import functools

import jax
import jax.numpy as jnp
from jax import lax
from jax.experimental import pallas as pl
from jax.experimental.pallas import tpu as pltpu


# ----------------------------- tuning helpers -------------------------------

_VMEM_LIMIT = None


def _vmem_limit_bytes():
    """Per-generation scoped-VMEM limit: ~80% of physical VMEM, capped at 96 MiB.

    v7x has 64 MiB physical VMEM per TensorCore -> ~51 MiB limit (headroom for
    internal scratch); v5e/v6e (128 MiB) -> 96 MiB so larger tiles fit.
    """
    global _VMEM_LIMIT
    if _VMEM_LIMIT is None:
        cap = 64 * 1024 * 1024          # conservative fallback (v7x physical)
        try:
            cap = int(pltpu.get_tpu_info().vmem_capacity_bytes)
        except Exception:
            pass
        _VMEM_LIMIT = min(int(cap * 0.8), 96 * 1024 * 1024)
    return _VMEM_LIMIT


def _cparams(sem):
    return pltpu.CompilerParams(dimension_semantics=sem,
                                vmem_limit_bytes=_vmem_limit_bytes())


_BUFFERED_OK = None


def _buffered_ok():
    """Probe once whether pl.Buffered(1) (single-buffered constants) lowers."""
    global _BUFFERED_OK
    if _BUFFERED_OK is None:
        try:
            def _probe(x_ref, o_ref):
                o_ref[...] = x_ref[...] + 1.0

            out = pl.pallas_call(
                _probe,
                out_shape=jax.ShapeDtypeStruct((16, 128), jnp.float32),
                grid=(2,),
                in_specs=[pl.BlockSpec((8, 128), lambda i: (0, 0),
                                       pipeline_mode=pl.Buffered(1))],
                out_specs=pl.BlockSpec((8, 128), lambda i: (i, 0)),
            )(jnp.zeros((8, 128), jnp.float32))
            jax.block_until_ready(out)
            _BUFFERED_OK = True
        except Exception:
            _BUFFERED_OK = False
    return _BUFFERED_OK


def _const_spec(block_shape, index_map):
    """BlockSpec for grid-invariant operands (weights/biases/LN params).

    Single-buffered: DMA'd once, no useless second pipeline buffer.  Reclaims
    several MiB of VMEM per kernel at BERT-base scale (critical on v7x's
    64 MiB VMEM) and lets the row tiles grow.
    """
    if _buffered_ok():
        return pl.BlockSpec(block_shape, index_map, pipeline_mode=pl.Buffered(1))
    return pl.BlockSpec(block_shape, index_map)


def _row_tile(s, cap=512):
    """Largest row tile <= cap that divides s (full s for small shapes).

    512-wide tiles reach ~85% of HBM roofline on mem-bound kernels vs ~63% at
    256 (measured on v6e) and halve the ~0.35us per-grid-step overhead.
    """
    if s <= cap:
        return s
    for t in (512, 384, 256, 128, 64, 32, 16, 8):
        if t <= cap and s % t == 0:
            return t
    # TODO(synk): pad S (or pl.cdiv grid + masked last tile) when S has no
    # divisor <= cap instead of falling back to one full-row block.
    return s


# ----------------------------- shared math -----------------------------------

def _ln(y, g, b, eps):
    mu = jnp.mean(y, axis=-1, keepdims=True)
    d = y - mu
    var = jnp.mean(d * d, axis=-1, keepdims=True)
    return d * lax.rsqrt(var + eps) * g + b


def _ffn_ln_math(x, w1, b1, w2, b2, g, beta, eps):
    h1 = jnp.dot(x, w1, preferred_element_type=jnp.float32) + b1
    # TODO(synk): tanh-approximate GELU; HF BERT default is the exact erf form.
    h1 = 0.5 * h1 * (1.0 + jnp.tanh(0.7978845608028654 *
                                    (h1 + 0.044715 * h1 * h1 * h1)))
    y = jnp.dot(h1.astype(jnp.bfloat16), w2, preferred_element_type=jnp.float32) + b2
    y = y + x.astype(jnp.float32)                        # residual
    return _ln(y, g, beta, eps)


def _lane_argmax(rows, n):
    """First-occurrence argmax over axis 0 of (n, ts); result (1, ts) int32."""
    m = jnp.max(rows, axis=0, keepdims=True)
    iota = lax.broadcasted_iota(jnp.int32, rows.shape, 0)
    cand = jnp.where(rows >= m, iota, n)
    return jnp.min(cand, axis=0, keepdims=True).astype(jnp.int32)


# ----------------------------- Pallas kernels ---------------------------------

def _embed_ln_kernel(tok_ref, pos_ref, type_ref, g_ref, b_ref, o_ref, *, eps):
    # word-emb gather (bf16) + position + token-type + LayerNorm fused: the f32
    # embedding sum never makes an HBM round trip.
    x = tok_ref[0].astype(jnp.float32) + pos_ref[...] + type_ref[...]
    o_ref[0] = _ln(x, g_ref[...], b_ref[...], eps).astype(o_ref.dtype)


def pallas_embed_ln(tok, pos, type_row, g, b, eps=1e-12):
    B, S, H = tok.shape
    ts = _row_tile(S)
    return pl.pallas_call(
        functools.partial(_embed_ln_kernel, eps=eps),
        out_shape=jax.ShapeDtypeStruct((B, S, H), jnp.bfloat16),
        grid=(B, S // ts),
        in_specs=[pl.BlockSpec((1, ts, H), lambda bb, ss: (bb, ss, 0)),
                  pl.BlockSpec((ts, H), lambda bb, ss: (ss, 0)),
                  _const_spec((1, H), lambda bb, ss: (0, 0)),
                  _const_spec((1, H), lambda bb, ss: (0, 0)),
                  _const_spec((1, H), lambda bb, ss: (0, 0))],
        out_specs=pl.BlockSpec((1, ts, H), lambda bb, ss: (bb, ss, 0)),
        compiler_params=_cparams(("parallel", "parallel")),
    )(tok, pos, type_row, g, b)


def _qkv_kernel(x_ref, w_ref, b_ref, q_ref, k_ref, v_ref):
    h = x_ref.shape[-1]
    nh, d = q_ref.shape[1], q_ref.shape[3]
    y = jnp.dot(x_ref[0], w_ref[...], preferred_element_type=jnp.float32)
    y = (y + b_ref[...]).astype(q_ref.dtype)             # (ts, 3H) bf16
    # TODO(synk): for D < 128 the per-head column slices are sub-128-lane
    # relayouts; the grid/BlockSpec alternatives cost ~2x extra MXU row-streams,
    # so the single fused matmul + split is kept (minimal relayout point).
    for hh in range(nh):
        lo = hh * d
        q_ref[0, hh] = y[:, lo:lo + d]
        k_ref[0, hh] = y[:, h + lo:h + lo + d]
        v_ref[0, hh] = y[:, 2 * h + lo:2 * h + lo + d]


def pallas_qkv(x, wqkv, bqkv, *, num_heads):
    B, S, H = x.shape
    D = H // num_heads
    ts = _row_tile(S)
    out_sd = jax.ShapeDtypeStruct((B, num_heads, S, D), jnp.bfloat16)
    head_spec = pl.BlockSpec((1, num_heads, ts, D), lambda bb, ss: (bb, 0, ss, 0))
    # TODO(synk): for very large H, tile the K (=H) contraction dim instead of
    # holding the whole [H,3H] weight resident.
    return pl.pallas_call(
        _qkv_kernel,
        out_shape=(out_sd, out_sd, out_sd),
        grid=(B, S // ts),
        in_specs=[pl.BlockSpec((1, ts, H), lambda bb, ss: (bb, ss, 0)),
                  _const_spec((H, 3 * H), lambda bb, ss: (0, 0)),
                  _const_spec((1, 3 * H), lambda bb, ss: (0, 0))],
        out_specs=(head_spec, head_spec, head_spec),
        compiler_params=_cparams(("parallel", "parallel")),
    )(x, wqkv, bqkv)


def _flash_attn_kernel(q_ref, k_ref, v_ref, mask_ref, o_ref,
                       m_sc, l_sc, acc_sc, *, scale):
    ki = pl.program_id(2)

    @pl.when(ki == 0)
    def _():
        m_sc[...] = jnp.full(m_sc.shape, -1e30, jnp.float32)
        l_sc[...] = jnp.zeros(l_sc.shape, jnp.float32)
        acc_sc[...] = jnp.zeros(acc_sc.shape, jnp.float32)

    q = q_ref[0]                                          # (NH, tq, D) bf16
    k = k_ref[0]                                          # (NH, tk, D) bf16
    v = v_ref[0]
    s = jnp.einsum('hqd,hkd->hqk', q, k,
                   preferred_element_type=jnp.float32) * scale
    s = s + mask_ref[0]                                   # (1, tk) additive mask

    m_prev = m_sc[...]
    m_new = jnp.maximum(m_prev, jnp.max(s, axis=-1, keepdims=True))
    alpha = jnp.exp(m_prev - m_new)
    p = jnp.exp(s - m_new)
    l_sc[...] = alpha * l_sc[...] + jnp.sum(p, axis=-1, keepdims=True)
    acc_sc[...] = alpha * acc_sc[...] + jnp.einsum(
        'hqk,hkd->hqd', p.astype(v.dtype), v, preferred_element_type=jnp.float32)
    m_sc[...] = m_new

    @pl.when(ki == pl.num_programs(2) - 1)
    def _():
        # approx reciprocal runs on the EUP (~2^-12 rel err); use an exact
        # divide instead if bit-level parity with torch softmax is required.
        o_ref[0] = (acc_sc[...] *
                    pl.reciprocal(l_sc[...], approx=True)).astype(o_ref.dtype)


def pallas_flash_attention(q, k, v, mask, scale):
    B, NH, S, D = q.shape
    # All heads per grid step: grid only (B, q-tile, kv-tile) -> ~NH x fewer
    # grid steps; a wide kv tile keeps the q@k^T MXU N dim >= 256.
    tq = _row_tile(S, cap=256)
    tk = _row_tile(S, cap=512)
    qspec = pl.BlockSpec((1, NH, tq, D), lambda b, qi, ki: (b, 0, qi, 0))
    kvspec = pl.BlockSpec((1, NH, tk, D), lambda b, qi, ki: (b, 0, ki, 0))
    # NOTE(v7x): leading parallel axes (B, q-tile) shard across the 2 TCs; for
    # B=1, S>tq workloads the q-tile axis still provides >=2 parallel work units.
    return pl.pallas_call(
        functools.partial(_flash_attn_kernel, scale=scale),
        out_shape=jax.ShapeDtypeStruct((B, NH, S, D), jnp.bfloat16),
        grid=(B, S // tq, S // tk),
        in_specs=[qspec, kvspec, kvspec,
                  # mask is [B,1,S]: shared across heads via the index_map
                  pl.BlockSpec((1, 1, tk), lambda b, qi, ki: (b, 0, ki))],
        out_specs=qspec,
        scratch_shapes=[pltpu.VMEM((NH, tq, 1), jnp.float32),
                        pltpu.VMEM((NH, tq, 1), jnp.float32),
                        pltpu.VMEM((NH, tq, D), jnp.float32)],
        compiler_params=_cparams(("parallel", "parallel", "arbitrary")),
    )(q, k, v, mask)


def _attn_out_ln_kernel(ctx_ref, res_ref, w_ref, b_ref, g_ref, beta_ref, o_ref,
                        *, eps):
    nh = ctx_ref.shape[1]
    # Head merge: the one unavoidable (ts,D)->(ts,H) lane relayout per tile.
    ctx = jnp.concatenate([ctx_ref[0, hh] for hh in range(nh)], axis=-1)
    y = jnp.dot(ctx, w_ref[...], preferred_element_type=jnp.float32) + b_ref[...]
    y = y + res_ref[0].astype(jnp.float32)                # residual
    o_ref[0] = _ln(y, g_ref[...], beta_ref[...], eps).astype(o_ref.dtype)


def pallas_attn_out_ln(ctx, res, wo, bo, g, b, eps=1e-12):
    B, NH, S, D = ctx.shape
    H = NH * D
    ts = _row_tile(S)
    return pl.pallas_call(
        functools.partial(_attn_out_ln_kernel, eps=eps),
        out_shape=jax.ShapeDtypeStruct((B, S, H), jnp.bfloat16),
        grid=(B, S // ts),
        in_specs=[pl.BlockSpec((1, NH, ts, D), lambda bb, ss: (bb, 0, ss, 0)),
                  pl.BlockSpec((1, ts, H), lambda bb, ss: (bb, ss, 0)),
                  _const_spec((H, H), lambda bb, ss: (0, 0)),
                  _const_spec((1, H), lambda bb, ss: (0, 0)),
                  _const_spec((1, H), lambda bb, ss: (0, 0)),
                  _const_spec((1, H), lambda bb, ss: (0, 0))],
        out_specs=pl.BlockSpec((1, ts, H), lambda bb, ss: (bb, ss, 0)),
        compiler_params=_cparams(("parallel", "parallel")),
    )(ctx, res, wo, bo, g, b)


def _ffn_ln_kernel(x_ref, w1_ref, b1_ref, w2_ref, b2_ref, g_ref, beta_ref, o_ref,
                   *, eps):
    o_ref[0] = _ffn_ln_math(x_ref[0], w1_ref[...], b1_ref[...], w2_ref[...],
                            b2_ref[...], g_ref[...], beta_ref[...],
                            eps).astype(o_ref.dtype)


def pallas_ffn_ln(x, w1, b1, w2, b2, g, b, eps=1e-12):
    B, S, H = x.shape
    I = w1.shape[1]
    ts = _row_tile(S)
    # TODO(synk): for very large intermediate sizes, tile the I contraction dim.
    return pl.pallas_call(
        functools.partial(_ffn_ln_kernel, eps=eps),
        out_shape=jax.ShapeDtypeStruct((B, S, H), jnp.bfloat16),
        grid=(B, S // ts),
        in_specs=[pl.BlockSpec((1, ts, H), lambda bb, ss: (bb, ss, 0)),
                  _const_spec((H, I), lambda bb, ss: (0, 0)),
                  _const_spec((1, I), lambda bb, ss: (0, 0)),
                  _const_spec((I, H), lambda bb, ss: (0, 0)),
                  _const_spec((1, H), lambda bb, ss: (0, 0)),
                  _const_spec((1, H), lambda bb, ss: (0, 0)),
                  _const_spec((1, H), lambda bb, ss: (0, 0))],
        out_specs=pl.BlockSpec((1, ts, H), lambda bb, ss: (bb, ss, 0)),
        compiler_params=_cparams(("parallel", "parallel")),
    )(x, w1, b1, w2, b2, g, b)


def _ffn_ln_heads_kernel(x_ref, w1_ref, b1_ref, w2_ref, b2_ref, g_ref, beta_ref,
                         hw_ref, hb_ref, ids_ref, *, eps, num_punct, num_cap):
    # last-layer FFN + LN, then dropout(identity) + both classifier heads +
    # argmax fused: the final [B,S,H] activation never hits HBM.
    y = _ffn_ln_math(x_ref[0], w1_ref[...], b1_ref[...], w2_ref[...], b2_ref[...],
                     g_ref[...], beta_ref[...], eps)       # (ts, H) f32
    logits = jnp.dot(y.astype(jnp.bfloat16), hw_ref[...],
                     preferred_element_type=jnp.float32) + hb_ref[...]   # (ts, C)
    lt = logits.T                                          # (C, ts) f32 (small)
    punct = _lane_argmax(lt[:num_punct], num_punct)        # (1, ts) int32
    cap = _lane_argmax(lt[num_punct:num_punct + num_cap], num_cap)
    ids_ref[0] = jnp.concatenate([punct, cap], axis=0)     # (2, ts), lane-dense


def pallas_ffn_ln_heads(x, w1, b1, w2, b2, g, b, head_w, head_b,
                        *, num_punct=4, num_cap=2, eps=1e-12):
    B, S, H = x.shape
    I = w1.shape[1]
    C = head_w.shape[1]
    ts = _row_tile(S)
    return pl.pallas_call(
        functools.partial(_ffn_ln_heads_kernel, eps=eps,
                          num_punct=num_punct, num_cap=num_cap),
        out_shape=jax.ShapeDtypeStruct((B, 2, S), jnp.int32),
        grid=(B, S // ts),
        in_specs=[pl.BlockSpec((1, ts, H), lambda bb, ss: (bb, ss, 0)),
                  _const_spec((H, I), lambda bb, ss: (0, 0)),
                  _const_spec((1, I), lambda bb, ss: (0, 0)),
                  _const_spec((I, H), lambda bb, ss: (0, 0)),
                  _const_spec((1, H), lambda bb, ss: (0, 0)),
                  _const_spec((1, H), lambda bb, ss: (0, 0)),
                  _const_spec((1, H), lambda bb, ss: (0, 0)),
                  _const_spec((H, C), lambda bb, ss: (0, 0)),
                  _const_spec((1, C), lambda bb, ss: (0, 0))],
        # lane-dense int32 output (last dim = ts): unmasked vst, no vst.msk.
        out_specs=pl.BlockSpec((1, 2, ts), lambda bb, ss: (bb, 0, ss)),
        compiler_params=_cparams(("parallel", "parallel")),
    )(x, w1, b1, w2, b2, g, b, head_w, head_b)


# ----------------------------- parameters -------------------------------------

def init_params(key, *, vocab_size, max_pos, hidden, intermediate, num_layers,
                num_punct=4, num_cap=2):
    keys = iter(jax.random.split(key, 16 + 8 * num_layers))
    std = 0.02
    wdt = jnp.bfloat16  # matmul weights stored bf16 (MXU-native, half HBM bytes)

    def nrm(shape, dtype=jnp.float32):
        return (jax.random.normal(next(keys), shape, jnp.float32) * std).astype(dtype)

    head_pad = 8  # 4 punct + 2 cap, padded; logits sliced before argmax
    head_w = jnp.zeros((hidden, head_pad), jnp.float32)
    head_w = head_w.at[:, :num_punct].set(nrm((hidden, num_punct)))
    head_w = head_w.at[:, num_punct:num_punct + num_cap].set(nrm((hidden, num_cap)))

    params = {
        "word_emb": nrm((vocab_size, hidden), wdt),   # bf16 gather traffic
        "pos_emb": nrm((max_pos, hidden)),
        "type_emb": nrm((2, hidden)),
        "emb_ln_g": jnp.ones((1, hidden), jnp.float32),
        "emb_ln_b": jnp.zeros((1, hidden), jnp.float32),
        "head_w": head_w.astype(wdt),
        "head_b": jnp.zeros((1, head_pad), jnp.float32),
        "layers": [],
    }
    for _ in range(num_layers):
        params["layers"].append({
            "wqkv": nrm((hidden, 3 * hidden), wdt),       # fused Q|K|V
            "bqkv": jnp.zeros((1, 3 * hidden), jnp.float32),
            "wo": nrm((hidden, hidden), wdt),
            "bo": jnp.zeros((1, hidden), jnp.float32),
            "ln1_g": jnp.ones((1, hidden), jnp.float32),
            "ln1_b": jnp.zeros((1, hidden), jnp.float32),
            "w1": nrm((hidden, intermediate), wdt),
            "b1": jnp.zeros((1, intermediate), jnp.float32),
            "w2": nrm((intermediate, hidden), wdt),
            "b2": jnp.zeros((1, hidden), jnp.float32),
            "ln2_g": jnp.ones((1, hidden), jnp.float32),
            "ln2_b": jnp.zeros((1, hidden), jnp.float32),
        })
    return params


# ----------------------------- forward pass -------------------------------------

def huydang_capu_forward(params, input_ids, attention_mask, *, num_heads):
    """Inference path of HuyDangCapuModel.forward -> (capital_idxs, punctuation_ids)."""
    B, S = input_ids.shape
    H = params["word_emb"].shape[1]
    D = H // num_heads

    # word-embedding gather is cheap XLA glue (bf16); pos/type add + LN fused in Pallas.
    tok = jnp.take(params["word_emb"], input_ids, axis=0)               # [B,S,H] bf16
    x = pallas_embed_ln(tok, params["pos_emb"][:S], params["type_emb"][:1],
                        params["emb_ln_g"], params["emb_ln_b"])          # bf16

    # additive attention mask, kept un-broadcast at [B, 1, S]
    mask = ((1.0 - attention_mask.astype(jnp.float32)) * -1e9).reshape(B, 1, S)
    scale = 1.0 / (D ** 0.5)

    n_layers = len(params["layers"])
    ids = None
    for li, lyr in enumerate(params["layers"]):
        q, k, v = pallas_qkv(x, lyr["wqkv"], lyr["bqkv"], num_heads=num_heads)
        ctx = pallas_flash_attention(q, k, v, mask, scale)
        x = pallas_attn_out_ln(ctx, x, lyr["wo"], lyr["bo"],
                               lyr["ln1_g"], lyr["ln1_b"])
        if li + 1 < n_layers:
            x = pallas_ffn_ln(x, lyr["w1"], lyr["b1"], lyr["w2"], lyr["b2"],
                              lyr["ln2_g"], lyr["ln2_b"])
        else:
            # dropout(0.1): identity at inference; heads fused into last FFN+LN.
            ids = pallas_ffn_ln_heads(x, lyr["w1"], lyr["b1"], lyr["w2"], lyr["b2"],
                                      lyr["ln2_g"], lyr["ln2_b"],
                                      params["head_w"], params["head_b"])

    punctuation_ids = ids[:, 0, :]
    capital_idxs = ids[:, 1, :]
    # matches: return (capital_idxs, punctuation_ids)
    return capital_idxs, punctuation_ids


# --------------------------------- main --------------------------------------------

if __name__ == "__main__":
    B, S, H, NH, I, L = 2, 8, 32, 2, 64, 2
    VOCAB, MAX_POS = 100, 16

    key = jax.random.PRNGKey(0)
    pkey, ikey = jax.random.split(key)

    params = init_params(pkey, vocab_size=VOCAB, max_pos=MAX_POS, hidden=H,
                         intermediate=I, num_layers=L)

    input_ids = jax.random.randint(ikey, (B, S), 0, VOCAB, dtype=jnp.int32)
    attention_mask = jnp.ones((B, S), jnp.float32).at[1, 6:].set(0.0)  # pad tail of seq 1

    capital_idxs, punctuation_ids = huydang_capu_forward(
        params, input_ids, attention_mask, num_heads=NH)
    jax.block_until_ready((capital_idxs, punctuation_ids))

    assert capital_idxs.shape == (B, S) and capital_idxs.dtype == jnp.int32
    assert punctuation_ids.shape == (B, S) and punctuation_ids.dtype == jnp.int32
    assert int(jnp.max(capital_idxs)) < 2 and int(jnp.min(capital_idxs)) >= 0
    assert int(jnp.max(punctuation_ids)) < 4 and int(jnp.min(punctuation_ids)) >= 0

    print("KERNEL_OK")
</pallas_src>

<mosaic_0001>
module attributes {stable_mosaic.version = 11 : i64} {
  func.func @_probe(%arg0: i32, %arg1: memref<8x128xf32, #tpu.memory_space<vmem>>, %arg2: memref<8x128xf32, #tpu.memory_space<vmem>>) attributes {dimension_semantics = [#tpu.dimension_semantics<arbitrary>], iteration_bounds = array<i64: 2>, scalar_prefetch = 0 : i64, scratch_operands = 0 : i64, tpu.core_type = #tpu.core_type<tc>, window_params = [{pipeline_mode = #tpu.pipeline_mode<synchronous>, transform_indices = @transform_0, window_bounds = array<i64: 8, 128>}, {transform_indices = @transform_1, window_bounds = array<i64: 8, 128>}]} {
    %c0 = arith.constant 0 : index
    %c0_0 = arith.constant 0 : index
    %0 = vector.load %arg1[%c0, %c0_0] : memref<8x128xf32, #tpu.memory_space<vmem>>, vector<8x128xf32>
    %cst = arith.constant 1.000000e+00 : f32
    %1 = vector.broadcast %cst : f32 to vector<8x128xf32>
    %2 = arith.addf %0, %1 : vector<8x128xf32>
    %c0_1 = arith.constant 0 : index
    %c0_2 = arith.constant 0 : index
    %3 = vector.load %arg2[%c0_1, %c0_2] : memref<8x128xf32, #tpu.memory_space<vmem>>, vector<8x128xf32>
    tpu.vector_store %arg2[%c0_1, %c0_2], %2 {strides = array<i32>} : memref<8x128xf32, #tpu.memory_space<vmem>>, vector<8x128xf32>,
    return
  }
  func.func @transform_0(%arg0: i32) -> (i32, i32) {
    %c0_i32 = arith.constant 0 : i32
    %c0_i32_0 = arith.constant 0 : i32
    %c0_i32_1 = arith.constant 0 : i32
    return %c0_i32, %c0_i32_0 : i32, i32
  }
  func.func @transform_1(%arg0: i32) -> (i32, i32) {
    %c0_i32 = arith.constant 0 : i32
    %c0_i32_0 = arith.constant 0 : i32
    return %arg0, %c0_i32 : i32, i32
  }
}

module attributes {stable_mosaic.version = 11 : i64} {
  func.func @_embed_ln_kernel(%arg0: i32, %arg1: i32, %arg2: memref<1x8x32xbf16, #tpu.memory_space<vmem>>, %arg3: memref<8x32xf32, #tpu.memory_space<vmem>>, %arg4: memref<1x32xf32, #tpu.memory_space<vmem>>, %arg5: memref<1x32xf32, #tpu.memory_space<vmem>>, %arg6: memref<1x32xf32, #tpu.memory_space<vmem>>, %arg7: memref<1x8x32xbf16, #tpu.memory_space<vmem>>) attributes {dimension_semantics = [#tpu.dimension_semantics<parallel>, #tpu.dimension_semantics<parallel>], iteration_bounds = array<i64: 2, 1>, scalar_prefetch = 0 : i64, scratch_operands = 0 : i64, tpu.core_type = #tpu.core_type<tc>, window_params = [{transform_indices = @transform_0, window_bounds = array<i64: 1, 8, 32>}, {transform_indices = @transform_1, window_bounds = array<i64: 8, 32>}, {pipeline_mode = #tpu.pipeline_mode<synchronous>, transform_indices = @transform_2, window_bounds = array<i64: 1, 32>}, {pipeline_mode = #tpu.pipeline_mode<synchronous>, transform_indices = @transform_3, window_bounds = array<i64: 1, 32>}, {pipeline_mode = #tpu.pipeline_mode<synchronous>, transform_indices = @transform_4, window_bounds = array<i64: 1, 32>}, {transform_indices = @transform_5, window_bounds = array<i64: 1, 8, 32>}]} {
    %c0 = arith.constant 0 : index
    %c0_0 = arith.constant 0 : index
    %c0_1 = arith.constant 0 : index
    %0 = vector.load %arg2[%c0, %c0_0, %c0_1] : memref<1x8x32xbf16, #tpu.memory_space<vmem>>, vector<1x8x32xbf16>
    %1 = vector.shape_cast %0 : vector<1x8x32xbf16> to vector<8x32xbf16>
    %2 = arith.extf %1 : vector<8x32xbf16> to vector<8x32xf32>
    %c0_2 = arith.constant 0 : index
    %c0_3 = arith.constant 0 : index
    %3 = vector.load %arg3[%c0_2, %c0_3] : memref<8x32xf32, #tpu.memory_space<vmem>>, vector<8x32xf32>
    %4 = arith.addf %2, %3 : vector<8x32xf32>
    %c0_4 = arith.constant 0 : index
    %c0_5 = arith.constant 0 : index
    %5 = vector.load %arg4[%c0_4, %c0_5] : memref<1x32xf32, #tpu.memory_space<vmem>>, vector<1x32xf32>
    %6 = vector.broadcast %5 : vector<1x32xf32> to vector<8x32xf32>
    %7 = arith.addf %4, %6 : vector<8x32xf32>
    %c0_6 = arith.constant 0 : index
    %c0_7 = arith.constant 0 : index
    %8 = vector.load %arg5[%c0_6, %c0_7] : memref<1x32xf32, #tpu.memory_space<vmem>>, vector<1x32xf32>
    %c0_8 = arith.constant 0 : index
    %c0_9 = arith.constant 0 : index
    %9 = vector.load %arg6[%c0_8, %c0_9] : memref<1x32xf32, #tpu.memory_space<vmem>>, vector<1x32xf32>
    %cst = arith.constant dense<0.000000e+00> : vector<8xf32>
    %10 = vector.multi_reduction <add>, %7, %cst [1] : vector<8x32xf32> to vector<8xf32>
    %11 = vector.shape_cast %10 : vector<8xf32> to vector<8x1xf32>
    %cst_10 = arith.constant 3.200000e+01 : f32
    %12 = vector.broadcast %cst_10 : f32 to vector<8x1xf32>
    %13 = arith.divf %11, %12 : vector<8x1xf32>
    %14 = vector.broadcast %13 : vector<8x1xf32> to vector<8x32xf32>
    %15 = arith.subf %7, %14 : vector<8x32xf32>
    %16 = arith.mulf %15, %15 : vector<8x32xf32>
    %cst_11 = arith.constant dense<0.000000e+00> : vector<8xf32>
    %17 = vector.multi_reduction <add>, %16, %cst_11 [1] : vector<8x32xf32> to vector<8xf32>
    %18 = vector.shape_cast %17 : vector<8xf32> to vector<8x1xf32>
    %cst_12 = arith.constant 3.200000e+01 : f32
    %19 = vector.broadcast %cst_12 : f32 to vector<8x1xf32>
    %20 = arith.divf %18, %19 : vector<8x1xf32>
    %cst_13 = arith.constant 9.99999996E-13 : f32
    %21 = vector.broadcast %cst_13 : f32 to vector<8x1xf32>
    %22 = arith.addf %20, %21 : vector<8x1xf32>
    %23 = math.rsqrt %22 : vector<8x1xf32>
    %24 = vector.broadcast %23 : vector<8x1xf32> to vector<8x32xf32>
    %25 = arith.mulf %15, %24 : vector<8x32xf32>
    %26 = vector.broadcast %8 : vector<1x32xf32> to vector<8x32xf32>
    %27 = arith.mulf %25, %26 : vector<8x32xf32>
    %28 = vector.broadcast %9 : vector<1x32xf32> to vector<8x32xf32>
    %29 = arith.addf %27, %28 : vector<8x32xf32>
    %30 = arith.truncf %29 : vector<8x32xf32> to vector<8x32xbf16>
    %c0_14 = arith.constant 0 : index
    %c0_15 = arith.constant 0 : index
    %c0_16 = arith.constant 0 : index
    %31 = vector.load %arg7[%c0_14, %c0_15, %c0_16] : memref<1x8x32xbf16, #tpu.memory_space<vmem>>, vector<1x8x32xbf16>
    %32 = vector.shape_cast %31 : vector<1x8x32xbf16> to vector<8x32xbf16>
    %33 = vector.shape_cast %30 : vector<8x32xbf16> to vector<1x8x32xbf16>
    tpu.vector_store %arg7[%c0_14, %c0_15, %c0_16], %33 {strides = array<i32>} : memref<1x8x32xbf16, #tpu.memory_space<vmem>>, vector<1x8x32xbf16>,
    return
  }
  func.func @transform_0(%arg0: i32, %arg1: i32) -> (i32, i32, i32) {
    %c0_i32 = arith.constant 0 : i32
    %c0_i32_0 = arith.constant 0 : i32
    return %arg0, %arg1, %c0_i32 : i32, i32, i32
  }
  func.func @transform_1(%arg0: i32, %arg1: i32) -> (i32, i32) {
    %c0_i32 = arith.constant 0 : i32
    %c0_i32_0 = arith.constant 0 : i32
    return %arg1, %c0_i32 : i32, i32
  }
  func.func @transform_2(%arg0: i32, %arg1: i32) -> (i32, i32) {
    %c0_i32 = arith.constant 0 : i32
    %c0_i32_0 = arith.constant 0 : i32
    %c0_i32_1 = arith.constant 0 : i32
    return %c0_i32, %c0_i32_0 : i32, i32
  }
  func.func @transform_3(%arg0: i32, %arg1: i32) -> (i32, i32) {
    %c0_i32 = arith.constant 0 : i32
    %c0_i32_0 = arith.constant 0 : i32
    %c0_i32_1 = arith.constant 0 : i32
    return %c0_i32, %c0_i32_0 : i32, i32
  }
  func.func @transform_4(%arg0: i32, %arg1: i32) -> (i32, i32) {
    %c0_i32 = arith.constant 0 : i32
    %c0_i32_0 = arith.constant 0 : i32
    %c0_i32_1 = arith.constant 0 : i32
    return %c0_i32, %c0_i32_0 : i32, i32
  }
  func.func @transform_5(%arg0: i32, %arg1: i32) -> (i32, i32, i32) {
    %c0_i32 = arith.constant 0 : i32
    %c0_i32_0 = arith.constant 0 : i32
    return %arg0, %arg1, %c0_i32 : i32, i32, i32
  }
}

</mosaic_0001>

<bundles_post_ra>
// kernel: tpu_custom_call.1
= control target key start
LH: loop header
LB: loop body
LE: loop exit
PB: predicated region body
PF: predicated region fallthrough
CT: control target
= control target key end

     0   :  { %6 = vsyncpa [#allocation3], 0  ;;  %s482_s0 = inlined_call_operand.hbm [shape: f32[8,128], index: 0, kind: input, shape index: {}]   ;;  %s483_s1 = inlined_call_operand.hbm [shape: f32[16,128], index: 1, kind: output, shape index: {}]  }
   0x1   :  { %7 = vsyncpa [#allocation4], 0 }
   0x2   :  { %9 = vsyncpa [#allocation4 + $0x1], 0  ;;  %s352_s6 = smov 0   ;;  %s354_s7 = smov 0  }
   0x3   :  { %s356_s8 = smov 0   ;;  %s358_s9 = smov 0  }
   0x4 LB: > { %s373_s10 = sadd.s32 4294967295, %s338_s9   ;;  %s184_s11 = sadd.s32 4294967294, %s338_s9   ;;  %s338_s9 = sphi %s358_s9, %s499_s9   ;;  %s334_s8 = sphi %s356_s8, %s498_s8   ;;  %s330_s7 = sphi %s354_s7, %s497_s7   ;;  %s326_s6 = sphi %s352_s6, %s496_s6  }
   0x5   : > { %s377_s12 = sadd.s32 1, %s338_s9   ;;  %s43_s13 = sadd.s32 1, %s334_s8 }
   0x6   : > { %s40_s14 = ssub.s32 %s338_s9, %s377_s12  ;;  %p53_p0 = scmp.ne.s32.totalorder %s334_s8, %s330_s7 }
   0x7   : > { %p41_p1 = scmp.eq.s32.totalorder %s40_s14, 0  ;;  %p54_p2 = scmp.eq.s32.totalorder %s373_s10, 1 }
   0x8   : > { %p59_p3 = scmp.ne.s32.totalorder %s330_s7, %s326_s6  ;;  %p60_p4 = scmp.eq.s32.totalorder %s184_s11, 1 }
   0x9   : > { %s388_s15 = scalar_select %p41_p1, %s334_s8, %s43_s13  }
   0xa   : > { %p390_p5 = por %p54_p2, %p53_p0  ;;  %p394_p6 = por %p60_p4, %p59_p3 }
   0xb   : > { %p185_p7 = scmp.ge.s32.totalorder %s338_s9, 1  ;;  %p67_p8 = scmp.lt.s32.totalorder %s338_s9, 3 }
   0xc   : > { %s487_s16 = scalar_select %p390_p5, 1, 0 }
   0xd   : > { %s488_s17 = scalar_select %p394_p6, 1, 0 }
   0xe   : > { %p484_p9 = scmp.eq.s32.totalorder %s373_s10, 0  ;;  %p401_p10 = pnand %p185_p7, %p67_p8 }
   0xf   : > { %s340_s19 = smov [#allocation2]   ;;  %s244_s24 = scalar_lea.hbm %s482_s0, 128 }
  0x10   : > { %s489_s18 = scalar_select %p401_p10, 1, 0 }
  0x11   : > { %s80_s20 = sshll.u32 %s340_s19, 4  ;;  %p200_p11 = pneg %p401_p10  ;;  %s81_s20 = int_to_ptr.vmem [resolvable:$true] %s80_s20 }
  0x12   : > { %p245_p13 = scmp.ne.s32.totalorder %s482_s0, %s244_s24  ;;  %p251_p3 = scmp.lt.u32.totalorder %s244_s24, %s482_s0 }
  0x13   : > { %p409_p12 = pnand %p484_p9, %p200_p11 }
  0x15   : > { %p246_p0 = pneg %p409_p12 }
  0x17   : > { %p247_p1 = pnand %p246_p0, %p245_p13 }
  0x19   : > { %p248_p2 = pneg %p247_p1 }
  0x1b   : > { %p253_p4 = pnand %p251_p3, %p248_p2 }
  0x1d   : > { %256 = shalt.err (!%p253_p4)
}
  0x1e   : > { %s257_s29 = scalar_lea.vmem %s81_s20, 128  ;;  %p265_p9 = scmp.lt.s32.totalorder %s81_s20, %s81_s20 }
  0x1f   : > { %p258_p7 = scmp.ne.s32.totalorder %s81_s20, %s257_s29  ;;  %p266_p6 = scmp.lt.s32.totalorder %s257_s29, %s257_s29 }
  0x21   : > { %p260_p8 = pnand %p258_p7, %p246_p0  ;;  %p267_p5 = por %p266_p6, %p265_p9 }
  0x23   : > { %p261_p11 = pneg %p260_p8 }
  0x25   : > { %p268_p10 = pnand %p267_p5, %p261_p11 }
  0x27   : > { %271 = shalt.err (!%p268_p10)
}
  0x28   : > { %203 = dma.hbm_to_vmem [thread:$0]  (!%p409_p12), %s482_s0, 128, %s81_s20, [#allocation3]  }
  0x29   : > { %p491_p13 = scmp.ne.s32.totalorder %s489_s18, 0 }
  0x2a   : > { %p492_p1 = scmp.eq.s32.totalorder (!%p491_p13), %s373_s10, 0 }
  0x2b   : > { %93 = sbr.rel (%p491_p13) target bundleno = 77 (0x4d), region = 24 }
  0x32   : > { %317 = dma.done.wait (%p492_p1), [#allocation3], 128   ;;  %p493_p0 = pmov %p492_p1 }
  0x33   : > { %s105_s3 = sand.u32 1, %s330_s7   ;;  %s191_s13 = sshll.u32 %s373_s10, 7  ;;  %v108_v0 = vld [vmem:[#allocation2] sm:$0xff] }
  0x34   : > { %319 = vsyncadd (%p493_p0), [#allocation3], 4294967168  ;;  %s189_s4 = sshll.u32 %s105_s3, 3  ;;  %v109_v1 = vadd.f32 1.0, %v108_v0  ;;  %s442_s19 = scalar_lea.hbm %s483_s1, %s191_s13 }
  0x35   : > { %s107_s5 = scalar_lea.vmem [#allocation5], %s189_s4  ;;  %s112_s20 = scalar_lea.sflag [#allocation4], %s105_s3 }
  0x36   : > { %s125_s11 = sshll.u32 %s107_s5, 4  ;;  %110 = vst [vmem:[%s107_s5] sm:$0xff] %v109_v1  ;;  %p494_p6 = scmp.ne.s32.totalorder %s487_s16, 0  ;;  %s437_s11 = int_to_ptr.vmem [resolvable:$true] %s125_s11 }
  0x37   : > { %s272_s21 = scalar_lea.vmem %s437_s11, 128  ;;  %s341_s10 = smov [#allocation5]  }
  0x38   : > { %p273_p5 = scmp.ne.s32.totalorder %s437_s11, %s272_s21  ;;  %s276_s22 = sshll.u32 %s341_s10, 4  ;;  %s277_s22 = int_to_ptr.vmem [resolvable:$false] %s276_s22 }
  0x39   : > { %s278_s23 = scalar_lea.vmem %s277_s22, 256  ;;  %p279_p12 = scmp.lt.s32.totalorder %s437_s11, %s277_s22 }
  0x3a   : > { %p274_p9 = pnand %p273_p5, %p494_p6  ;;  %p280_p2 = scmp.lt.s32.totalorder %s278_s23, %s272_s21 }
  0x3c   : > { %p275_p10 = pneg %p274_p9  ;;  %p281_p3 = por %p280_p2, %p279_p12 }
  0x3e   : > { %p282_p4 = pnand %p281_p3, %p275_p10 }
  0x40   : > { %285 = shalt.err (!%p282_p4)
}
  0x41   : > { %s286_s24 = scalar_lea.hbm %s442_s19, 128  ;;  %s290_s27 = scalar_lea.hbm %s483_s1, 256 }
  0x42   : > { %p287_p7 = scmp.ne.s32.totalorder %s442_s19, %s286_s24  ;;  %p291_p13 = scmp.lt.u32.totalorder %s442_s19, %s483_s1 }
  0x43   : > { %p292_p1 = scmp.lt.u32.totalorder %s290_s27, %s286_s24  ;;  %p294_p5 = scmp.lt.u32.totalorder %s286_s24, %s442_s19 }
  0x44   : > { %p288_p8 = pnand %p287_p7, %p494_p6 }
  0x45   : > { %p293_p0 = por %p292_p1, %p291_p13 }
  0x46   : > { %p289_p11 = pneg %p288_p8 }
  0x47   : > { %p295_p9 = por %p294_p5, %p293_p0 }
  0x49   : > { %p296_p10 = pnand %p295_p9, %p289_p11 }
  0x4b   : > { %299 = shalt.err (!%p296_p10)
}
  0x4c   : > { %198 = dma.vmem_to_hbm [thread:$0]  (%p494_p6), %s437_s11, 128, %s442_s19, %s112_s20  }
  0x4d PF: > { %p210_p12 = scmp.ge.s32.totalorder %s338_s9, 2  ;;  %s137_s30 = sand.u32 1, %s326_s6  }
  0x4e   : > { %p495_p2 = scmp.ne.s32.totalorder %s488_s17, 0  ;;  %s138_s2 = scalar_lea.sflag [#allocation4], %s137_s30 }
  0x50   : > { %p205_p3 = pnand %p210_p12, %p495_p2 }
  0x52   : > { %321 = dma.done.wait (!%p205_p3), %s138_s2, 128  }
  0x53   : > { %323 = vsyncadd (!%p205_p3), %s138_s2, 4294967168  ;;  %p12_p4 = scmp.ge.s32.totalorder %s377_s12, 4   ;;  %s496_s6 = smov %s330_s7 }
  0x54   : > { %s497_s7 = smov %s334_s8  ;;  %s498_s8 = smov %s388_s15 }
  0x55   : > { %s499_s9 = smov %s377_s12  ;;  %14 = sbr.rel (!%p12_p4) target bundleno = 4 (0x4), region = 61 }
  0x5c   :  { %143 = vsyncpa [#allocation3], 1 }
  0x5d   :  { %145 = vsyncpa [#allocation3 + $0x1], 1 }
  0x5e   :  { %146 = vsyncpa [#allocation4], 1 }
  0x5f   :  { %148 = vsyncpa [#allocation4 + $0x1], 1 }

// kernel: tpu_custom_call.1
= control target key start
LH: loop header
LB: loop body
LE: loop exit
PB: predicated region body
PF: predicated region fallthrough
CT: control target
= control target key end

     0   :  { %10 = vsyncpa [#allocation3], 0  ;;  %s931_s0 = inlined_call_operand.hbm [shape: bf16[2,8,32], index: 0, kind: input, shape index: {}]   ;;  %s932_s1 = inlined_call_operand.hbm [shape: f32[8,32], index: 1, kind: input, shape index: {}]   ;;  %s933_s2 = inlined_call_operand.vmem [shape: f32[1,32], index: 2, kind: input, shape index: {}]   ;;  %s934_s3 = inlined_call_operand.vmem [shape: f32[1,32], index: 3, kind: input, shape index: {}]   ;;  %s935_s4 = inlined_call_operand.vmem [shape: f32[1,32], index: 4, kind: input, shape index: {}]   ;;  %s936_s5 = inlined_call_operand.hbm [shape: bf16[2,8,32], index: 5, kind: output, shape index: {}]  }
   0x1   :  { %12 = vsyncpa [#allocation3 + $0x1], 0 }
   0x2   :  { %13 = vsyncpa [#allocation6], 0 }
   0x3   :  { %14 = vsyncpa [#allocation4], 0 }
   0x4   :  { %16 = vsyncpa [#allocation4 + $0x1], 0  ;;  %s702_s18 = smov 0   ;;  %s704_s19 = smov 0  }
   0x5   :  { %s706_s20 = smov 0   ;;  %s708_s21 = smov 0  }
   0x6   :  { %s710_s22 = smov 0   ;;  %s712_s23 = smov 0  }
   0x7 LB: > { %s430_s24 = sadd.s32 4294967295, %s667_s23   ;;  %s431_s25 = sadd.s32 4294967294, %s667_s23   ;;  %s667_s23 = sphi %s712_s23, %s22_s23   ;;  %s663_s22 = sphi %s710_s22, %s961_s22   ;;  %s659_s21 = sphi %s708_s21, %s960_s21   ;;  %s655_s20 = sphi %s706_s20, %s959_s20   ;;  %s651_s19 = sphi %s704_s19, %s958_s19   ;;  %s647_s18 = sphi %s702_s18, %s957_s18  }
   0x8   : > { %p56_p0 = scmp.ne.s32.totalorder %s651_s19, %s647_s18  ;;  %p736_p1 = scmp.eq.s32.totalorder %s430_s24, 0 }
   0x9   : > { %p740_p2 = scmp.eq.s32.totalorder %s430_s24, 1  ;;  %p177_p3 = scmp.eq.s32.totalorder %s431_s25, 1 }
   0xa   : > { %s941_s26 = scalar_select %p736_p1, 1, 0 }
   0xb   : > { %s942_s27 = scalar_select %p740_p2, 1, 0 }
   0xc   : > { %p746_p4 = por %p736_p1, %p56_p0  ;;  %p432_p5 = scmp.ge.s32.totalorder %s667_s23, 1 }
   0xd   : > { %p751_p6 = por %p177_p3, %p56_p0  ;;  %p184_p7 = scmp.lt.s32.totalorder %s667_s23, 3 }
   0xe   : > { %s943_s28 = scalar_select %p746_p4, 1, 0 }
   0xf   : > { %s944_s29 = scalar_select %p751_p6, 1, 0 }
  0x10   : > { %p756_p8 = pnand %p432_p5, %p184_p7  ;;  %s669_s6 = smov [#allocation5]  }
  0x11   : > { %s199_s7 = sshll.u32 %s669_s6, 4  ;;  %s34_s9 = sadd.s32 1, %s663_s22  ;;  %s200_s7 = int_to_ptr.vmem [resolvable:$true] %s199_s7 }
  0x12   : > { %s945_s30 = scalar_select %p756_p8, 1, 0 }
  0x13   : > { %p456_p10 = pneg %p756_p8  ;;  %s43_s10 = sadd.s32 1, %s655_s20 }
  0x14   : > { %p771_p12 = scmp.ge.s32.totalorder %s34_s9, 2  ;;  %s523_s14 = scalar_lea.hbm %s932_s1, 128 }
  0x15   : > { %p765_p11 = pnand %p456_p10, %p736_p1  ;;  %p524_p13 = scmp.ne.s32.totalorder %s932_s1, %s523_s14 }
  0x16   : > { %s947_s11 = scalar_select %p771_p12, 1, 0 }
  0x17   : > { %p525_p0 = pneg %p765_p11  ;;  %p530_p7 = scmp.lt.u32.totalorder %s523_s14, %s932_s1 }
  0x19   : > { %p526_p3 = pnand %p525_p0, %p524_p13 }
  0x1b   : > { %p527_p5 = pneg %p526_p3 }
  0x1d   : > { %p532_p10 = pnand %p530_p7, %p527_p5 }
  0x1f   : > { %535 = shalt.err (!%p532_p10)
}
  0x20   : > { %s536_s25 = scalar_lea.vmem %s200_s7, 128  ;;  %p544_p4 = scmp.lt.s32.totalorder %s200_s7, %s200_s7 }
  0x21   : > { %p537_p9 = scmp.ne.s32.totalorder %s200_s7, %s536_s25  ;;  %p545_p8 = scmp.lt.s32.totalorder %s536_s25, %s536_s25 }
  0x23   : > { %p539_p6 = pnand %p537_p9, %p525_p0  ;;  %p546_p2 = por %p545_p8, %p544_p4 }
  0x25   : > { %p540_p1 = pneg %p539_p6 }
  0x27   : > { %p547_p12 = pnand %p546_p2, %p540_p1 }
  0x29   : > { %550 = shalt.err (!%p547_p12)
}
  0x2a   : > { %459 = dma.hbm_to_vmem [thread:$0]  (!%p765_p11), %s932_s1, 128, %s200_s7, [#allocation6]  }
  0x2b   : > { %p948_p4 = scmp.ne.s32.totalorder %s947_s11, 0  ;;  %p50_p1 = scmp.ne.s32.totalorder %s655_s20, %s651_s19 }
  0x2c   : > { %p51_p2 = scmp.eq.s32.totalorder %s667_s23, 0  ;;  %p469_p6 = scmp.lt.s32.totalorder %s667_s23, 2 }
  0x2d   : > { %s963_s9 = smov (%p948_p4, %s34_s9), 0  ;;  %p949_p12 = scmp.ne.s32.totalorder %s942_s27, 0 }
  0x2e   : > { %s38_s8 = ssub.s32 %s663_s22, %s963_s9  ;;  %p52_p9 = por %p51_p2, %p50_p1 }
  0x2f   : > { %p41_p8 = scmp.eq.s32.totalorder %s38_s8, 0  ;;  %p803_p13 = por %p949_p12, %p50_p1 }
  0x30   : > { %s219_s14 = sand.u32 1, %s655_s20   ;;  %s436_s11 = sshll.u32 %s663_s22, 6 }
  0x31   : > { %s811_s15 = scalar_select %p41_p8, %s655_s20, %s43_s10  }
  0x32   : > { %s435_s7 = sshll.u32 %s219_s14, 2  ;;  %s817_s24 = scalar_lea.hbm %s931_s0, %s436_s11 }
  0x33   : > { %s223_s27 = scalar_lea.vmem [#allocation2], %s435_s7  ;;  %p821_p11 = pnand %p469_p6, %p52_p9 }
  0x34   : > { %s231_s25 = sshll.u32 %s223_s27, 4  ;;  %s220_s10 = scalar_lea.sflag [#allocation3], %s219_s14  ;;  %s819_s25 = int_to_ptr.vmem [resolvable:$true] %s231_s25 }
  0x35   : > { %s551_s12 = scalar_lea.hbm %s817_s24, 64  ;;  %p553_p3 = pneg %p821_p11 }
  0x36   : > { %p552_p0 = scmp.ne.s32.totalorder %s817_s24, %s551_s12  ;;  %s556_s11 = scalar_lea.hbm %s931_s0, 128 }
  0x37   : > { %p557_p10 = scmp.lt.u32.totalorder %s817_s24, %s931_s0  ;;  %p558_p4 = scmp.lt.u32.totalorder %s556_s11, %s551_s12 }
  0x38   : > { %p554_p5 = pnand %p553_p3, %p552_p0  ;;  %p560_p2 = scmp.lt.u32.totalorder %s551_s12, %s817_s24 }
  0x39   : > { %p559_p1 = por %p558_p4, %p557_p10 }
  0x3a   : > { %p555_p7 = pneg %p554_p5 }
  0x3b   : > { %p561_p6 = por %p560_p2, %p559_p1 }
  0x3d   : > { %p562_p8 = pnand %p561_p6, %p555_p7 }
  0x3f   : > { %565 = shalt.err (!%p562_p8)
}
  0x40   : > { %s566_s14 = scalar_lea.vmem %s819_s25, 64  ;;  %s670_s27 = smov [#allocation2]  }
  0x41   : > { %p567_p9 = scmp.ne.s32.totalorder %s819_s25, %s566_s14  ;;  %s571_s8 = sshll.u32 %s670_s27, 4  ;;  %s572_s8 = int_to_ptr.vmem [resolvable:$false] %s571_s8 }
  0x42   : > { %s573_s7 = scalar_lea.vmem %s572_s8, 128  ;;  %p574_p5 = scmp.lt.s32.totalorder %s819_s25, %s572_s8 }
  0x43   : > { %p569_p12 = pnand %p567_p9, %p553_p3  ;;  %p575_p10 = scmp.lt.s32.totalorder %s573_s7, %s566_s14 }
  0x45   : > { %p570_p0 = pneg %p569_p12  ;;  %p576_p4 = por %p575_p10, %p574_p5 }
  0x47   : > { %p577_p1 = pnand %p576_p4, %p570_p0 }
  0x49   : > { %580 = shalt.err (!%p577_p1)
}
  0x4a   : > { %463 = dma.hbm_to_vmem [thread:$0]  (!%p821_p11), %s817_s24, 64, %s819_s25, %s220_s10  }
  0x4b   : > { %p952_p7 = scmp.ne.s32.totalorder %s945_s30, 0 }
  0x4c   : > { %s853_s12 = sand.u32 (!%p952_p7), 1, %s651_s19   ;;  %p953_p3 = scmp.ne.s32.totalorder (!%p952_p7), %s943_s28, 0 }
  0x4d   : > { %240 = sbr.rel (%p952_p7) target bundleno = 424 (0x1a8), region = 40  ;;  %s438_s11 = sshll.u32 (!%p952_p7), %s853_s12, 2 }
  0x4e   : > { %s243_s16 = scalar_lea.sflag (!%p952_p7), [#allocation3], %s853_s12  ;;  %s246_s17 = scalar_lea.vmem (!%p952_p7), [#allocation2], %s438_s11 }
  0x54   : > { %634 = dma.done.wait (%p953_p3), %s243_s16, 64  }
  0x55   : > { %636 = vsyncadd (%p953_p3), %s243_s16, 4294967232  ;;  %p954_p11 = scmp.ne.s32.totalorder %s941_s26, 0 }
  0x57   : > { %638 = dma.done.wait (%p954_p11), [#allocation6], 128  }
  0x58   : > { %640 = vsyncadd (%p954_p11), [#allocation6], 4294967168  ;;  %v277_v0 = vld [vmem:[%s246_s17] sm:$0xf]  ;;  %v279_v1 = vld [vmem:[#allocation5] sm:$0xff]  ;;  %vm291_vm0 = vcmask 261120  }
  0x59   : > { %v278_v2 = vunpack.c.l.bf16 %v277_v0  ;;  %v441_v3 = vld [vmem:[%s933_s2] ss:$0 sm:$0xff]  ;;  %s445_s10 = sshll.u32 %s659_s21, 6  ;;  %s276_s14 = scalar_lea.vmem [#allocation7], %s438_s11  ;;  %vm321_vm1 = vcmask 257024  }
  0x5a   : > { %v442_v16 = vld [vmem:[%s934_s3] ss:$0 sm:$0xff]  ;;  %s338_s27 = sshll.u32 %s276_s14, 4  ;;  %s882_s16 = scalar_lea.hbm %s936_s5, %s445_s10  ;;  %s884_s27 = int_to_ptr.vmem [resolvable:$true] %s338_s27 }
  0x5b   : > { %v280_v4 = vadd.f32 %v279_v1, %v278_v2  ;;  %v443_v18 = vld [vmem:[%s935_s4] ss:$0 sm:$0xff]  ;;  %s324_s17 = scalar_lea.sflag [#allocation4], %s853_s12  ;;  %s581_s30 = scalar_lea.vmem %s884_s27, 64 }
  0x5c   : > { %p582_p2 = scmp.ne.s32.totalorder %s884_s27, %s581_s30  ;;  %s671_s21 = smov [#allocation7]  }
  0x5d   : > { %v288_v5 = vadd.f32 %v441_v3, %v280_v4  ;;  %s585_s11 = sshll.u32 %s671_s21, 4  ;;  %s586_s11 = int_to_ptr.vmem [resolvable:$false] %s585_s11 }
  0x5e   : > { %p583_p6 = pnand %p582_p2, %p803_p13  ;;  %s587_s24 = scalar_lea.vmem %s586_s11, 128 }
  0x5f   : > { %v292_v6 = vsel %vm291_vm0, %v288_v5, 0.0  ;;  %p588_p9 = scmp.lt.s32.totalorder %s884_s27, %s586_s11  ;;  %p589_p12 = scmp.lt.s32.totalorder %s587_s24, %s581_s30 }
  0x60   : > { %293 = vadd.xlane.f32.xlu0 %v292_v6  ;;  %p584_p8 = pneg %p583_p6 }
  0x61   : > { %p590_p0 = por %p589_p12, %p588_p9 }
  0x63   : > { %p591_p5 = pnand %p590_p0, %p584_p8 }
  0xed   : > { %v294_v7 = vpop.xlane.xlu0 %293 }
  0xee   : > { %v296_v8 = vmul.f32 0.03125, %v294_v7 }
  0xf0   : > { %v297_v9 = vsub.f32 %v288_v5, %v296_v8 }
  0xf2   : > { %v298_v10 = vmul.f32 %v297_v9, %v297_v9 }
  0xf4   : > { %v299_v11 = vsel %vm291_vm0, %v298_v10, 0.0 }
  0xf5   : > { %300 = vadd.xlane.f32.xlu0 %v299_v11 }
 0x182   : > { %v301_v12 = vpop.xlane.xlu0 %300 }
 0x183   : > { %v302_v13 = vmul.f32 0.03125, %v301_v12 }
 0x185   : > { %v303_v14 = vadd.f32 1e-12, %v302_v13 }
 0x187   : > { %521 = vrsqrt.f32 %v303_v14 }
 0x191   : > { %v522_v15 = vpop.eup %521 }
 0x192   : > { %v305_v17 = vmul.f32 %v522_v15, %v297_v9 }
 0x194   : > { %v312_v19 = vmul.f32 %v442_v16, %v305_v17 }
 0x196   : > { %v319_v20 = vadd.f32 %v443_v18, %v312_v19 }
 0x198   : > { %v320_v21 = vpack.c.bf16 %v319_v20, %v319_v20 }
 0x19a   : > { %322 = vst.msk [vmem:[%s276_s14] sm:$0xf] %vm321_vm1, %v320_v21 }
 0x19b   : > { %594 = shalt.err (!%p591_p5)
}
 0x19c   : > { %s595_s12 = scalar_lea.hbm %s882_s16, 64  ;;  %s599_s25 = scalar_lea.hbm %s936_s5, 128 }
 0x19d   : > { %p596_p10 = scmp.ne.s32.totalorder %s882_s16, %s595_s12  ;;  %p600_p7 = scmp.lt.u32.totalorder %s882_s16, %s936_s5 }
 0x19e   : > { %p601_p3 = scmp.lt.u32.totalorder %s599_s25, %s595_s12  ;;  %p603_p2 = scmp.lt.u32.totalorder %s595_s12, %s882_s16 }
 0x19f   : > { %p597_p4 = pnand %p596_p10, %p803_p13 }
 0x1a0   : > { %p602_p11 = por %p601_p3, %p600_p7 }
 0x1a1   : > { %p598_p1 = pneg %p597_p4 }
 0x1a2   : > { %p604_p6 = por %p603_p2, %p602_p11 }
 0x1a4   : > { %p605_p8 = pnand %p604_p6, %p598_p1 }
 0x1a6   : > { %608 = shalt.err (!%p605_p8)
}
 0x1a7   : > { %454 = dma.vmem_to_hbm [thread:$0]  (%p803_p13), %s884_s27, 64, %s882_s16, %s324_s17  }
 0x1a8 PF: > { %s350_s14 = sand.u32 1, %s647_s18   ;;  %p955_p9 = scmp.ne.s32.totalorder %s944_s29, 0 }
 0x1a9   : > { %p956_p12 = scmp.ge.s32.totalorder %s667_s23, 2  ;;  %s351_s8 = scalar_lea.sflag [#allocation4], %s350_s14 }
 0x1ab   : > { %p465_p0 = pnand %p956_p12, %p955_p9 }
 0x1ad   : > { %642 = dma.done.wait (!%p465_p0), %s351_s8, 64  }
 0x1ae   : > { %644 = vsyncadd (!%p465_p0), %s351_s8, 4294967232  ;;  %s22_s23 = sadd.s32 1, %s667_s23   ;;  %s957_s18 = smov %s651_s19 }
 0x1af   : > { %p19_p5 = scmp.ge.s32.totalorder %s22_s23, 4   ;;  %s958_s19 = smov %s655_s20 }
 0x1b0   : > { %s959_s20 = smov %s811_s15  ;;  %s960_s21 = smov %s663_s22 }
 0x1b1   : > { %s961_s22 = smov %s963_s9  ;;  %21 = sbr.rel (!%p19_p5) target bundleno = 7 (0x7), region = 90 }
 0x1b8   :  { %356 = vsyncpa [#allocation3], 1 }
 0x1b9   :  { %358 = vsyncpa [#allocation3 + $0x1], 1 }
 0x1ba   :  { %359 = vsyncpa [#allocation6], 1 }
 0x1bb   :  { %360 = vsyncpa [#allocation4], 1 }
 0x1bc   :  { %362 = vsyncpa [#allocation4 + $0x1], 1 }

</bundles_post_ra>
